<compile_context>
chip_gen: v6e
topology: v6e:2x2x1
jax: 0.10.0
libtpu: 0.0.40
codegen_flags: <defaults>
</compile_context>

<pallas_src>
import jax
import jax.numpy as jnp
from jax.experimental import pallas as pl
from jax.experimental.pallas import tpu as pltpu

LANE = 128
SUBLANE = 8


def _cdiv(a, b):
    return (a + b - 1) // b


def _round_up(n, m):
    return _cdiv(n, m) * m


def skip_mlp_kernel(x_ref, w0_ref, b0_ref, w1_ref, b1_ref, w2_ref, b2_ref, o_ref):
    """One batch tile of the whole forward pass. All feature dims are lane-padded to 128."""
    # x arrives as f32 straight from HBM; cast to bf16 in-kernel just before the MXU.
    x = x_ref[...].astype(jnp.bfloat16)  # (TB, F_pad)

    # --- SkipBlock 0: in_dim -> hidden, ReLU (dims differ -> no residual) ---
    h0 = jnp.dot(x, w0_ref[...], preferred_element_type=jnp.float32) + b0_ref[...]
    h0 = jnp.maximum(h0, 0.0)  # f32; padded hidden lanes are exactly 0

    # --- SkipBlock 1: hidden -> hidden, ReLU, residual skip ---
    h1 = jnp.dot(h0.astype(w1_ref.dtype), w1_ref[...],
                 preferred_element_type=jnp.float32) + b1_ref[...]
    h1 = jnp.maximum(h1, 0.0) + h0  # residual in f32; padded lanes stay 0

    # --- SkipBlock 2 (head): hidden -> out_dim, Softmax(dim=1), skip=False ---
    logits = jnp.dot(h1.astype(w2_ref.dtype), w2_ref[...],
                     preferred_element_type=jnp.float32) + b2_ref[...]
    m = jnp.max(logits, axis=-1, keepdims=True)
    e = jnp.exp(logits - m)                       # padded lanes: exp(-1e30 - m) -> 0
    denom = jnp.sum(e, axis=-1, keepdims=True)
    # Exact divide (EUP otherwise idle) so output rows sum to exactly 1.
    o_ref[...] = (e / denom).astype(o_ref.dtype)


def skip_mlp_forward(x_nchw, params, *, tb_max=2048):
    """x_nchw: [B, C, H, W] float32.  params: dict of (w0,b0,w1,b1,w2,b2) in float32."""
    B = x_nchw.shape[0]
    x_flat = x_nchw.reshape(B, -1)        # == nn.Flatten() on NCHW
    F = x_flat.shape[1]

    w0, b0, w1, b1, w2, b2 = (params[k] for k in ("w0", "b0", "w1", "b1", "w2", "b2"))
    in_dim, hidden = w0.shape
    out_dim = w2.shape[1]
    assert in_dim == F

    # Lane-pad all feature dims to multiples of 128 (dense MXU passes, unmasked stores).
    # Deliberately NOT padded to 256: the kernel is HBM-bound, padding to the v6e/v7x MXU
    # width would only add DMA bytes.
    F_p = _round_up(F, LANE)
    H_p = _round_up(hidden, LANE)
    O_p = _round_up(out_dim, LANE)
    NEG = jnp.float32(-1e30)

    def pad2(a, rows, cols, fill=0.0):
        return jnp.pad(a, ((0, rows - a.shape[0]), (0, cols - a.shape[1])),
                       constant_values=fill)

    # Weights in bf16 (halves DMA bytes + VMEM footprint); biases stay f32.
    w0p = pad2(w0, F_p, H_p).astype(jnp.bfloat16)
    b0p = pad2(b0, 1, H_p)
    w1p = pad2(w1, H_p, H_p).astype(jnp.bfloat16)
    b1p = pad2(b1, 1, H_p)
    w2p = pad2(w2, H_p, O_p).astype(jnp.bfloat16)
    if O_p > out_dim:
        # Padded logit lanes get a huge negative f32 bias (added post-accumulation) so
        # softmax assigns them ~0 mass.
        b2p = jnp.concatenate(
            [b2, jnp.full((1, O_p - out_dim), NEG, jnp.float32)], axis=1)
    else:
        b2p = b2

    # ---- Batch tiling ----
    # Right-size TB: split B_p into enough tiles that (a) each tile <= tb_max, and
    # (b) there are >= 2 grid steps whenever the batch can be split (v7x megacore:
    # "parallel" axis shards across its 2 TensorCores; harmless on v5e/v6e).
    # TB=2048 f32 x tiles (8 MiB) + out tiles, double-buffered, plus ~0.6 MiB resident
    # weights stays under the 32 MiB scoped-VMEM default on all generations.
    B_p = _round_up(B, SUBLANE)
    min_tiles = 2 if B_p >= 2 * SUBLANE else 1
    n_tiles = max(_cdiv(B_p, tb_max), min_tiles)
    TB = _round_up(_cdiv(B_p, n_tiles), SUBLANE)
    grid = (_cdiv(B_p, TB),)
    B_pad = grid[0] * TB

    # x stays float32: only the (small) batch pad; F is already a multiple of 128 here.
    x_p = pad2(x_flat, B_pad, F_p)        # f32, cast to bf16 inside the kernel

    flops = 2 * B_pad * (F_p * H_p + H_p * H_p + H_p * O_p)
    bytes_accessed = (x_p.size * 4                                    # f32 x read
                      + (w0p.size + w1p.size + w2p.size) * 2          # bf16 weights
                      + (b0p.size + b1p.size + b2p.size) * 4          # f32 biases
                      + B_pad * O_p * 4)                              # f32 output write
    cost = pl.CostEstimate(flops=flops, transcendentals=B_pad * O_p,
                           bytes_accessed=bytes_accessed)

    const = lambda i: (0, 0)  # weights/biases: same block every tile -> stay VMEM-resident

    out = pl.pallas_call(
        skip_mlp_kernel,
        out_shape=jax.ShapeDtypeStruct((B_pad, O_p), jnp.float32),
        grid=grid,
        in_specs=[
            pl.BlockSpec((TB, F_p), lambda i: (i, 0)),   # x tile (auto double-buffered)
            pl.BlockSpec((F_p, H_p), const),             # w0
            pl.BlockSpec((1, H_p), const),               # b0
            pl.BlockSpec((H_p, H_p), const),             # w1
            pl.BlockSpec((1, H_p), const),               # b1
            pl.BlockSpec((H_p, O_p), const),             # w2
            pl.BlockSpec((1, O_p), const),               # b2
        ],
        out_specs=pl.BlockSpec((TB, O_p), lambda i: (i, 0)),  # lane-dense store
        compiler_params=pltpu.CompilerParams(dimension_semantics=("parallel",)),
        cost_estimate=cost,
    )(x_p, w0p, b0p, w1p, b1p, w2p, b2p)

    return out[:B, :out_dim]


def init_params(key, in_dim, hidden_dim, out_dim):
    """Deterministic synthetic init (shapes match the torch module's Linears, transposed)."""
    ks = jax.random.split(key, 6)

    def lin(kw, kb, fan_in, fan_out):
        scale = 1.0 / jnp.sqrt(fan_in)
        w = jax.random.uniform(kw, (fan_in, fan_out), jnp.float32, -scale, scale)
        b = jax.random.uniform(kb, (1, fan_out), jnp.float32, -scale, scale)
        return w, b

    w0, b0 = lin(ks[0], ks[1], in_dim, hidden_dim)
    w1, b1 = lin(ks[2], ks[3], hidden_dim, hidden_dim)
    w2, b2 = lin(ks[4], ks[5], hidden_dim, out_dim)
    return dict(w0=w0, b0=b0, w1=w1, b1=b1, w2=w2, b2=b2)


def reference_forward(x_nchw, p):
    """Pure-JAX reference mirroring the kernel numerics (bf16 matmul inputs, f32 accumulate)."""
    x = x_nchw.reshape(x_nchw.shape[0], -1).astype(jnp.bfloat16)
    w0 = p["w0"].astype(jnp.bfloat16)
    w1 = p["w1"].astype(jnp.bfloat16)
    w2 = p["w2"].astype(jnp.bfloat16)
    h0 = jnp.maximum(jnp.dot(x, w0, preferred_element_type=jnp.float32) + p["b0"], 0.0)
    h1 = jnp.maximum(jnp.dot(h0.astype(jnp.bfloat16), w1,
                             preferred_element_type=jnp.float32) + p["b1"], 0.0) + h0
    logits = jnp.dot(h1.astype(jnp.bfloat16), w2,
                     preferred_element_type=jnp.float32) + p["b2"]
    return jax.nn.softmax(logits, axis=1)


if __name__ == "__main__":
    key = jax.random.PRNGKey(0)
    k_x, k_p = jax.random.split(key)

    B, C, H, W = 2, 4, 16, 16           # input shape [2, 4, 16, 16] (NCHW)
    in_dim = C * H * W                   # 1024 after Flatten
    hidden_dim = 32
    out_dim = 8

    x = jax.random.normal(k_x, (B, C, H, W), dtype=jnp.float32)
    params = init_params(k_p, in_dim, hidden_dim, out_dim)

    out = skip_mlp_forward(x, params)
    out = jax.block_until_ready(out)

    ref = reference_forward(x, params)
    assert out.shape == (B, out_dim)
    # Tolerance covers bf16 matmul inputs + f32 accumulation-order deltas (softmax divide
    # is exact now, so rows sum to ~1).
    assert jnp.allclose(out, ref, atol=1e-3, rtol=1e-3)
    assert jnp.allclose(jnp.sum(out, axis=1), jnp.ones((B,), jnp.float32), atol=1e-5)

    print("KERNEL_OK")
</pallas_src>

<mosaic_0001>
module attributes {stable_mosaic.version = 11 : i64} {
  func.func @skip_mlp_kernel(%arg0: i32, %arg1: memref<8x1024xf32, #tpu.memory_space<vmem>>, %arg2: memref<1024x128xbf16, #tpu.memory_space<vmem>>, %arg3: memref<1x128xf32, #tpu.memory_space<vmem>>, %arg4: memref<128x128xbf16, #tpu.memory_space<vmem>>, %arg5: memref<1x128xf32, #tpu.memory_space<vmem>>, %arg6: memref<128x128xbf16, #tpu.memory_space<vmem>>, %arg7: memref<1x128xf32, #tpu.memory_space<vmem>>, %arg8: memref<8x128xf32, #tpu.memory_space<vmem>>) attributes {dimension_semantics = [#tpu.dimension_semantics<parallel>], iteration_bounds = array<i64: 1>, scalar_prefetch = 0 : i64, scratch_operands = 0 : i64, tpu.core_type = #tpu.core_type<tc>, window_params = [{transform_indices = @transform_0, window_bounds = array<i64: 8, 1024>}, {pipeline_mode = #tpu.pipeline_mode<synchronous>, transform_indices = @transform_1, window_bounds = array<i64: 1024, 128>}, {pipeline_mode = #tpu.pipeline_mode<synchronous>, transform_indices = @transform_2, window_bounds = array<i64: 1, 128>}, {pipeline_mode = #tpu.pipeline_mode<synchronous>, transform_indices = @transform_3, window_bounds = array<i64: 128, 128>}, {pipeline_mode = #tpu.pipeline_mode<synchronous>, transform_indices = @transform_4, window_bounds = array<i64: 1, 128>}, {pipeline_mode = #tpu.pipeline_mode<synchronous>, transform_indices = @transform_5, window_bounds = array<i64: 128, 128>}, {pipeline_mode = #tpu.pipeline_mode<synchronous>, transform_indices = @transform_6, window_bounds = array<i64: 1, 128>}, {transform_indices = @transform_7, window_bounds = array<i64: 8, 128>}]} {
    %c0 = arith.constant 0 : index
    %c0_0 = arith.constant 0 : index
    %0 = vector.load %arg1[%c0, %c0_0] : memref<8x1024xf32, #tpu.memory_space<vmem>>, vector<8x1024xf32>
    %1 = arith.truncf %0 : vector<8x1024xf32> to vector<8x1024xbf16>
    %c0_1 = arith.constant 0 : index
    %c0_2 = arith.constant 0 : index
    %2 = vector.load %arg2[%c0_1, %c0_2] : memref<1024x128xbf16, #tpu.memory_space<vmem>>, vector<1024x128xbf16>
    %cst = arith.constant dense<0.000000e+00> : vector<8x128xf32>
    %3 = tpu.matmul %1, %2, %cst {dimension_numbers = #tpu.dot_dimension_numbers<[1], [0], [0], [1], [0, 0, 1, 1], [], []>} : vector<8x1024xbf16>, vector<1024x128xbf16>, vector<8x128xf32> -> vector<8x128xf32>
    %c0_3 = arith.constant 0 : index
    %c0_4 = arith.constant 0 : index
    %4 = vector.load %arg3[%c0_3, %c0_4] : memref<1x128xf32, #tpu.memory_space<vmem>>, vector<1x128xf32>
    %5 = vector.broadcast %4 : vector<1x128xf32> to vector<8x128xf32>
    %6 = arith.addf %3, %5 : vector<8x128xf32>
    %cst_5 = arith.constant 0.000000e+00 : f32
    %7 = vector.broadcast %cst_5 : f32 to vector<8x128xf32>
    %8 = arith.maximumf %6, %7 : vector<8x128xf32>
    %9 = arith.truncf %8 : vector<8x128xf32> to vector<8x128xbf16>
    %c0_6 = arith.constant 0 : index
    %c0_7 = arith.constant 0 : index
    %10 = vector.load %arg4[%c0_6, %c0_7] : memref<128x128xbf16, #tpu.memory_space<vmem>>, vector<128x128xbf16>
    %cst_8 = arith.constant dense<0.000000e+00> : vector<8x128xf32>
    %11 = tpu.matmul %9, %10, %cst_8 {dimension_numbers = #tpu.dot_dimension_numbers<[1], [0], [0], [1], [0, 0, 1, 1], [], []>} : vector<8x128xbf16>, vector<128x128xbf16>, vector<8x128xf32> -> vector<8x128xf32>
    %c0_9 = arith.constant 0 : index
    %c0_10 = arith.constant 0 : index
    %12 = vector.load %arg5[%c0_9, %c0_10] : memref<1x128xf32, #tpu.memory_space<vmem>>, vector<1x128xf32>
    %13 = vector.broadcast %12 : vector<1x128xf32> to vector<8x128xf32>
    %14 = arith.addf %11, %13 : vector<8x128xf32>
    %cst_11 = arith.constant 0.000000e+00 : f32
    %15 = vector.broadcast %cst_11 : f32 to vector<8x128xf32>
    %16 = arith.maximumf %14, %15 : vector<8x128xf32>
    %17 = arith.addf %16, %8 : vector<8x128xf32>
    %18 = arith.truncf %17 : vector<8x128xf32> to vector<8x128xbf16>
    %c0_12 = arith.constant 0 : index
    %c0_13 = arith.constant 0 : index
    %19 = vector.load %arg6[%c0_12, %c0_13] : memref<128x128xbf16, #tpu.memory_space<vmem>>, vector<128x128xbf16>
    %cst_14 = arith.constant dense<0.000000e+00> : vector<8x128xf32>
    %20 = tpu.matmul %18, %19, %cst_14 {dimension_numbers = #tpu.dot_dimension_numbers<[1], [0], [0], [1], [0, 0, 1, 1], [], []>} : vector<8x128xbf16>, vector<128x128xbf16>, vector<8x128xf32> -> vector<8x128xf32>
    %c0_15 = arith.constant 0 : index
    %c0_16 = arith.constant 0 : index
    %21 = vector.load %arg7[%c0_15, %c0_16] : memref<1x128xf32, #tpu.memory_space<vmem>>, vector<1x128xf32>
    %22 = vector.broadcast %21 : vector<1x128xf32> to vector<8x128xf32>
    %23 = arith.addf %20, %22 : vector<8x128xf32>
    %cst_17 = arith.constant dense<0xFF800000> : vector<8xf32>
    %24 = vector.multi_reduction <maximumf>, %23, %cst_17 [1] : vector<8x128xf32> to vector<8xf32>
    %25 = vector.shape_cast %24 : vector<8xf32> to vector<8x1xf32>
    %26 = vector.broadcast %25 : vector<8x1xf32> to vector<8x128xf32>
    %27 = arith.subf %23, %26 : vector<8x128xf32>
    %28 = math.exp %27 : vector<8x128xf32>
    %cst_18 = arith.constant dense<0.000000e+00> : vector<8xf32>
    %29 = vector.multi_reduction <add>, %28, %cst_18 [1] : vector<8x128xf32> to vector<8xf32>
    %30 = vector.shape_cast %29 : vector<8xf32> to vector<8x1xf32>
    %31 = vector.broadcast %30 : vector<8x1xf32> to vector<8x128xf32>
    %32 = arith.divf %28, %31 : vector<8x128xf32>
    %c0_19 = arith.constant 0 : index
    %c0_20 = arith.constant 0 : index
    %33 = vector.load %arg8[%c0_19, %c0_20] : memref<8x128xf32, #tpu.memory_space<vmem>>, vector<8x128xf32>
    tpu.vector_store %arg8[%c0_19, %c0_20], %32 {strides = array<i32>} : memref<8x128xf32, #tpu.memory_space<vmem>>, vector<8x128xf32>,
    return
  }
  func.func @transform_0(%arg0: i32) -> (i32, i32) {
    %c0_i32 = arith.constant 0 : i32
    %c0_i32_0 = arith.constant 0 : i32
    return %arg0, %c0_i32 : i32, i32
  }
  func.func @transform_1(%arg0: i32) -> (i32, i32) {
    %c0_i32 = arith.constant 0 : i32
    %c0_i32_0 = arith.constant 0 : i32
    %c0_i32_1 = arith.constant 0 : i32
    return %c0_i32, %c0_i32_0 : i32, i32
  }
  func.func @transform_2(%arg0: i32) -> (i32, i32) {
    %c0_i32 = arith.constant 0 : i32
    %c0_i32_0 = arith.constant 0 : i32
    %c0_i32_1 = arith.constant 0 : i32
    return %c0_i32, %c0_i32_0 : i32, i32
  }
  func.func @transform_3(%arg0: i32) -> (i32, i32) {
    %c0_i32 = arith.constant 0 : i32
    %c0_i32_0 = arith.constant 0 : i32
    %c0_i32_1 = arith.constant 0 : i32
    return %c0_i32, %c0_i32_0 : i32, i32
  }
  func.func @transform_4(%arg0: i32) -> (i32, i32) {
    %c0_i32 = arith.constant 0 : i32
    %c0_i32_0 = arith.constant 0 : i32
    %c0_i32_1 = arith.constant 0 : i32
    return %c0_i32, %c0_i32_0 : i32, i32
  }
  func.func @transform_5(%arg0: i32) -> (i32, i32) {
    %c0_i32 = arith.constant 0 : i32
    %c0_i32_0 = arith.constant 0 : i32
    %c0_i32_1 = arith.constant 0 : i32
    return %c0_i32, %c0_i32_0 : i32, i32
  }
  func.func @transform_6(%arg0: i32) -> (i32, i32) {
    %c0_i32 = arith.constant 0 : i32
    %c0_i32_0 = arith.constant 0 : i32
    %c0_i32_1 = arith.constant 0 : i32
    return %c0_i32, %c0_i32_0 : i32, i32
  }
  func.func @transform_7(%arg0: i32) -> (i32, i32) {
    %c0_i32 = arith.constant 0 : i32
    %c0_i32_0 = arith.constant 0 : i32
    return %arg0, %c0_i32 : i32, i32
  }
}

</mosaic_0001>

<bundles_post_ra>
// kernel: tpu_custom_call.1
= control target key start
LH: loop header
LB: loop body
LE: loop exit
PB: predicated region body
PF: predicated region fallthrough
CT: control target
= control target key end

     0   :  { %12 = vsyncpa [#allocation3], 0  ;;  %s1560_s0 = inlined_call_operand.hbm [shape: f32[8,1024], index: 0, kind: input, shape index: {}]   ;;  %s1561_s1 = inlined_call_operand.hbm [shape: bf16[1024,128], index: 1, kind: input, shape index: {}]   ;;  %s1562_s2 = inlined_call_operand.vmem [shape: f32[1,128], index: 2, kind: input, shape index: {}]   ;;  %s1563_s3 = inlined_call_operand.hbm [shape: bf16[128,128], index: 3, kind: input, shape index: {}]   ;;  %s1564_s4 = inlined_call_operand.vmem [shape: f32[1,128], index: 4, kind: input, shape index: {}]   ;;  %s1565_s5 = inlined_call_operand.hbm [shape: bf16[128,128], index: 5, kind: input, shape index: {}]   ;;  %s1566_s6 = inlined_call_operand.vmem [shape: f32[1,128], index: 6, kind: input, shape index: {}]   ;;  %s1567_s7 = inlined_call_operand.hbm [shape: f32[8,128], index: 7, kind: output, shape index: {}]  }
   0x1   :  { %13 = vsyncpa [#allocation6], 0 }
   0x2   :  { %14 = vsyncpa [#allocation9], 0 }
   0x3   :  { %15 = vsyncpa [#allocation4], 0  ;;  %s1460_s24 = smov [#allocation5]  }
   0x4   :  { %s31_s25 = sshll.u32 %s1460_s24, 4  ;;  %s32_s25 = int_to_ptr.vmem [resolvable:$true] %s31_s25 }
   0x5   :  { %s1360_s26 = scalar_lea.vmem %s32_s25, 8192  ;;  %p1365_p1 = scmp.lt.s32.totalorder %s32_s25, %s32_s25 }
   0x6   :  { %p1361_p0 = scmp.ne.s32.totalorder %s32_s25, %s1360_s26  ;;  %p1366_p2 = scmp.lt.s32.totalorder %s1360_s26, %s1360_s26 }
   0x8   :  { %p1367_p3 = por %p1366_p2, %p1365_p1 }
   0xa   :  { %p1368_p4 = pnand %p1367_p3, %p1361_p0 }
   0xc   :  { %1371 = shalt.err (!%p1368_p4)
}
   0xd   :  { %s1461_s27 = smov 64   ;;  %s1462_s28 = smov 4  }
   0xe   :  { %37 = dma.hbm_to_vmem [thread:$0]  %s1561_s1, 8192, %s32_s25, [#allocation6], %s1461_s27, %s1461_s27, %s1462_s28  }
   0xf   :  { %s1463_s8 = smov [#allocation2]   ;;  %s1464_s10 = smov [#allocation7]  }
  0x10   :  { %s22_s9 = sshll.u32 %s1463_s8, 4  ;;  %s45_s11 = sshll.u32 %s1464_s10, 4  ;;  %s23_s9 = int_to_ptr.vmem [resolvable:$true] %s22_s9  ;;  %s46_s11 = int_to_ptr.vmem [resolvable:$true] %s45_s11 }
  0x11   :  { %s1380_s12 = scalar_lea.vmem %s23_s9, 1024  ;;  %p1385_p6 = scmp.lt.s32.totalorder %s23_s9, %s23_s9 }
  0x12   :  { %p1381_p5 = scmp.ne.s32.totalorder %s23_s9, %s1380_s12  ;;  %p1386_p7 = scmp.lt.s32.totalorder %s1380_s12, %s1380_s12 }
  0x14   :  { %p1387_p8 = por %p1386_p7, %p1385_p6 }
  0x16   :  { %p1388_p9 = pnand %p1387_p8, %p1381_p5 }
  0x18   :  { %1391 = shalt.err (!%p1388_p9)
}
  0x19   :  { %25 = dma.hbm_to_vmem [thread:$0]  %s1560_s0, 1024, %s23_s9, [#allocation3]  }
  0x1a   :  { %s1400_s15 = scalar_lea.vmem %s46_s11, 1024  ;;  %p1405_p11 = scmp.lt.s32.totalorder %s46_s11, %s46_s11 }
  0x1b   :  { %p1401_p10 = scmp.ne.s32.totalorder %s46_s11, %s1400_s15  ;;  %p1406_p12 = scmp.lt.s32.totalorder %s1400_s15, %s1400_s15 }
  0x1d   :  { %p1407_p13 = por %p1406_p12, %p1405_p11 }
  0x1f   :  { %p1408_p0 = pnand %p1407_p13, %p1401_p10 }
  0x21   :  { %1411 = shalt.err (!%p1408_p0)
}
  0x22   :  { %51 = dma.hbm_to_vmem [thread:$0]  %s1563_s3, 1024, %s46_s11, [#allocation6], %s1461_s27, %s1461_s27, %s1462_s28  }
  0x23   :  { %s1465_s17 = smov [#allocation8]  }
  0x24   :  { %s59_s18 = sshll.u32 %s1465_s17, 4  ;;  %s60_s18 = int_to_ptr.vmem [resolvable:$true] %s59_s18 }
  0x25   :  { %s1420_s19 = scalar_lea.vmem %s60_s18, 1024  ;;  %p1425_p2 = scmp.lt.s32.totalorder %s60_s18, %s60_s18 }
  0x26   :  { %p1421_p1 = scmp.ne.s32.totalorder %s60_s18, %s1420_s19  ;;  %p1426_p3 = scmp.lt.s32.totalorder %s1420_s19, %s1420_s19 }
  0x28   :  { %p1427_p4 = por %p1426_p3, %p1425_p2 }
  0x2a   :  { %p1428_p5 = pnand %p1427_p4, %p1421_p1 }
  0x2c   :  { %1431 = shalt.err (!%p1428_p5)
}
  0x2d   :  { %65 = dma.hbm_to_vmem [thread:$0]  %s1565_s5, 1024, %s60_s18, [#allocation9], %s1461_s27, %s1461_s27, %s1462_s28  }
  0x2e   :  { %1452 = dma.done.wait [#allocation3], 1024  }
  0x2f   :  { %1453 = vsyncadd [#allocation3], 4294966272 }
  0x30   :  { %1454 = dma.done.wait [#allocation6], 9216  }
  0x31   :  { %1455 = vsyncadd [#allocation6], 4294958080 }
  0x32   :  { %1456 = dma.done.wait [#allocation9], 1024  }
  0x33   :  { %1457 = vsyncadd [#allocation9], 4294966272  ;;  %v1268_v0 = vld [vmem:[#allocation5 + $0x78] sm:$0xff]   ;;  %v1272_v4 = vld [vmem:[#allocation5 + $0x70] sm:$0xff]   ;;  %vm1467_vm0 = vmmov 0  }
  0x34   :  { %v1269_v1 = vld [vmem:[#allocation5 + $0xf8] sm:$0xff]   ;;  %1113 = vmatprep.subr.bf16.mxu0 %v1268_v0  ;;  %v1273_v5 = vld [vmem:[#allocation5 + $0xf0] sm:$0xff]   ;;  %v1276_v8 = vld [vmem:[#allocation5 + $0x68] sm:$0xff]  }
  0x35   :  { %v1270_v2 = vld [vmem:[#allocation5 + $0x38] sm:$0xff]   ;;  %1135 = vmatprep.subr.bf16.mxu1 %v1269_v1  ;;  %v1274_v6 = vld [vmem:[#allocation5 + $0x30] sm:$0xff]   ;;  %v1277_v9 = vld [vmem:[#allocation5 + $0xe8] sm:$0xff]  }
  0x36   :  { %v1271_v3 = vld [vmem:[#allocation5 + $0xb8] sm:$0xff]   ;;  %1114 = vmatpush3.bf16.msra.mxu0 %v1270_v2  ;;  %v1275_v7 = vld [vmem:[#allocation5 + $0xb0] sm:$0xff]   ;;  %v1278_v10 = vld [vmem:[#allocation5 + $0x28] sm:$0xff]  }
  0x37   :  { %1136 = vmatpush3.bf16.msra.mxu1 %v1271_v3  ;;  %1115 = vmatprep.subr.bf16.mxu0 %v1272_v4  ;;  %v1279_v11 = vld [vmem:[#allocation5 + $0xa8] sm:$0xff]   ;;  %v1280_v12 = vld [vmem:[#allocation5 + $0x60] sm:$0xff]   ;;  %v1284_v16 = vld [vmem:[#allocation5 + $0x58] sm:$0xff]  }
  0x38   :  { %1137 = vmatprep.subr.bf16.mxu1 %v1273_v5  ;;  %v1281_v13 = vld [vmem:[#allocation5 + $0xe0] sm:$0xff]   ;;  %v1285_v17 = vld [vmem:[#allocation5 + $0xd8] sm:$0xff]   ;;  %v1288_v20 = vld [vmem:[#allocation5 + $0x50] sm:$0xff]  }
  0x39   :  { %v1282_v14 = vld [vmem:[#allocation5 + $0x20] sm:$0xff]   ;;  %v1286_v18 = vld [vmem:[#allocation5 + $0x18] sm:$0xff]   ;;  %v1289_v21 = vld [vmem:[#allocation5 + $0xd0] sm:$0xff]  }
  0x3a   :  { %1116 = vmatpush3.bf16.msra.mxu0 %v1274_v6  ;;  %v1283_v15 = vld [vmem:[#allocation5 + $0xa0] sm:$0xff]   ;;  %v1287_v19 = vld [vmem:[#allocation5 + $0x98] sm:$0xff]   ;;  %v1290_v22 = vld [vmem:[#allocation5 + $0x10] sm:$0xff]  }
  0x3b   :  { %1138 = vmatpush3.bf16.msra.mxu1 %v1275_v7  ;;  %1117 = vmatprep.subr.bf16.mxu0 %v1276_v8  ;;  %v1291_v23 = vld [vmem:[#allocation5 + $0x90] sm:$0xff]   ;;  %v1292_v24 = vld [vmem:[#allocation5 + $0x48] sm:$0xff]   ;;  %v1296_v28 = vld [vmem:[#allocation5 + $0x40] sm:$0xff]  }
  0x3c   :  { %1139 = vmatprep.subr.bf16.mxu1 %v1277_v9  ;;  %v1293_v25 = vld [vmem:[#allocation5 + $0xc8] sm:$0xff]   ;;  %v1297_v29 = vld [vmem:[#allocation5 + $0xc0] sm:$0xff]   ;;  %v84_v33 = vld [vmem:[#allocation2 + $0x18] sm:$0xff] }
  0x3d   :  { %v1294_v26 = vld [vmem:[#allocation5 + $0x8] sm:$0xff]   ;;  %v1298_v30 = vld [vmem:[#allocation5] sm:$0xff]   ;;  %v92_v36 = vpack.c.bf16 %v84_v33, %v84_v33  ;;  %v83_v38 = vld [vmem:[#allocation2 + $0x10] sm:$0xff] }
  0x3e   :  { %1118 = vmatpush3.bf16.msra.mxu0 %v1278_v10  ;;  %v1295_v27 = vld [vmem:[#allocation5 + $0x88] sm:$0xff]   ;;  %v1299_v31 = vld [vmem:[#allocation5 + $0x80] sm:$0xff]   ;;  %v91_v39 = vpack.c.bf16 %v83_v38, %v83_v38  ;;  %v1300_v40 = vld [vmem:[#allocation5 + $0x178] sm:$0xff]  }
  0x3f   :  { %1140 = vmatpush3.bf16.msra.mxu1 %v1279_v11  ;;  %1119 = vmatprep.subr.bf16.mxu0 %v1280_v12  ;;  %v82_v32 = vld [vmem:[#allocation2 + $0x8] sm:$0xff]  ;;  %v81_v34 = vld [vmem:[#allocation2] sm:$0xff]  ;;  %v1301_v41 = vld [vmem:[#allocation5 + $0x1f8] sm:$0xff]  }
  0x40   :  { %1141 = vmatprep.subr.bf16.mxu1 %v1281_v13  ;;  %v90_v35 = vpack.c.bf16 %v82_v32, %v82_v32  ;;  %v89_v37 = vpack.c.bf16 %v81_v34, %v81_v34  ;;  %688 = vmatprep.mubr.bf16.mxu1 %v92_v36  ;;  %v1302_v42 = vld [vmem:[#allocation5 + $0x138] sm:$0xff]   ;;  %v1304_v44 = vld [vmem:[#allocation5 + $0x170] sm:$0xff]   ;;  %v1308_v48 = vld [vmem:[#allocation5 + $0x168] sm:$0xff]  }
  0x41   :  { %v1303_v43 = vld [vmem:[#allocation5 + $0x1b8] sm:$0xff]   ;;  %v1305_v45 = vld [vmem:[#allocation5 + $0x1f0] sm:$0xff]   ;;  %v1309_v49 = vld [vmem:[#allocation5 + $0x1e8] sm:$0xff]  }
  0x42   :  { %1120 = vmatpush3.bf16.msra.mxu0 %v1282_v14  ;;  %648 = vmatprep.mubr.bf16.mxu0 %v90_v35  ;;  %v1306_v46 = vld [vmem:[#allocation5 + $0x130] sm:$0xff]   ;;  %v1310_v50 = vld [vmem:[#allocation5 + $0x128] sm:$0xff]   ;;  %v1312_v52 = vld [vmem:[#allocation5 + $0x160] sm:$0xff]  }
  0x43   :  { %1142 = vmatpush3.bf16.msra.mxu1 %v1283_v15  ;;  %1121 = vmatprep.subr.bf16.mxu0 %v1284_v16  ;;  %v1307_v47 = vld [vmem:[#allocation5 + $0x1b0] sm:$0xff]   ;;  %v1311_v51 = vld [vmem:[#allocation5 + $0x1a8] sm:$0xff]   ;;  %v1313_v53 = vld [vmem:[#allocation5 + $0x1e0] sm:$0xff]  }
  0x44   :  { %1143 = vmatprep.subr.bf16.mxu1 %v1285_v17  ;;  %v1314_v54 = vld [vmem:[#allocation5 + $0x120] sm:$0xff]   ;;  %v1316_v56 = vld [vmem:[#allocation5 + $0x158] sm:$0xff]   ;;  %v1320_v60 = vld [vmem:[#allocation5 + $0x150] sm:$0xff]   ;;  %v1466_v17 = vmov 0.0  }
  0x45   :  { %v1315_v55 = vld [vmem:[#allocation5 + $0x1a0] sm:$0xff]   ;;  %v1317_v57 = vld [vmem:[#allocation5 + $0x1d8] sm:$0xff]   ;;  %v1321_v61 = vld [vmem:[#allocation5 + $0x1d0] sm:$0xff]  }
  0x46   :  { %1122 = vmatpush3.bf16.msra.mxu0 %v1286_v18  ;;  %v1318_v58 = vld [vmem:[#allocation5 + $0x118] sm:$0xff]   ;;  %v1322_v62 = vld [vmem:[#allocation5 + $0x110] sm:$0xff]   ;;  %v1324_v0 = vld [vmem:[#allocation5 + $0x148] sm:$0xff]  }
  0x47   :  { %1144 = vmatpush3.bf16.msra.mxu1 %v1287_v19  ;;  %1123 = vmatprep.subr.bf16.mxu0 %v1288_v20  ;;  %v1319_v59 = vld [vmem:[#allocation5 + $0x198] sm:$0xff]   ;;  %v1323_v63 = vld [vmem:[#allocation5 + $0x190] sm:$0xff]   ;;  %v1325_v1 = vld [vmem:[#allocation5 + $0x1c8] sm:$0xff]  }
  0x48   :  { %1145 = vmatprep.subr.bf16.mxu1 %v1289_v21  ;;  %v1326_v2 = vld [vmem:[#allocation5 + $0x108] sm:$0xff]   ;;  %v1328_v4 = vld [vmem:[#allocation5 + $0x140] sm:$0xff]   ;;  %v88_v9 = vld [vmem:[#allocation2 + $0x38] sm:$0xff] }
  0x49   :  { %v1327_v3 = vld [vmem:[#allocation5 + $0x188] sm:$0xff]   ;;  %v1329_v5 = vld [vmem:[#allocation5 + $0x1c0] sm:$0xff]   ;;  %v96_v11 = vpack.c.bf16 %v88_v9, %v88_v9  ;;  %v87_v13 = vld [vmem:[#allocation2 + $0x30] sm:$0xff] }
  0x4a   :  { %1124 = vmatpush3.bf16.msra.mxu0 %v1290_v22  ;;  %v1330_v6 = vld [vmem:[#allocation5 + $0x100] sm:$0xff]   ;;  %v86_v8 = vld [vmem:[#allocation2 + $0x28] sm:$0xff]  ;;  %v95_v15 = vpack.c.bf16 %v87_v13, %v87_v13  ;;  %v1332_v16 = vld [vmem:[#allocation7 + $0x38] sm:$0xff]  }
  0x4b   :  { %1146 = vmatpush3.bf16.msra.mxu1 %v1291_v23  ;;  %1125 = vmatprep.subr.bf16.mxu0 %v1292_v24  ;;  %v1331_v7 = vld [vmem:[#allocation5 + $0x180] sm:$0xff]   ;;  %v94_v10 = vpack.c.bf16 %v86_v8, %v86_v8  ;;  %v1333_v18 = vld [vmem:[#allocation7 + $0x30] sm:$0xff]   ;;  %v1334_v19 = vld [vmem:[#allocation7 + $0x28] sm:$0xff]  }
  0x4c   :  { %1147 = vmatprep.subr.bf16.mxu1 %v1293_v25  ;;  %v85_v12 = vld [vmem:[#allocation2 + $0x20] sm:$0xff]  ;;  %v1336_v21 = vld [vmem:[#allocation7 + $0x18] sm:$0xff]   ;;  %v1337_v22 = vld [vmem:[#allocation7 + $0x10] sm:$0xff]  }
  0x4d   :  { %v93_v14 = vpack.c.bf16 %v85_v12, %v85_v12  ;;  %v1335_v20 = vld [vmem:[#allocation7 + $0x20] sm:$0xff]   ;;  %v1338_v23 = vld [vmem:[#allocation7 + $0x8] sm:$0xff]   ;;  %v1340_v25 = vld [vmem:[#allocation8 + $0x38] sm:$0xff]  }
  0x4e   :  { %1126 = vmatpush3.bf16.msra.mxu0 %v1294_v26  ;;  %v1339_v24 = vld [vmem:[#allocation7] sm:$0xff]   ;;  %v1341_v26 = vld [vmem:[#allocation8 + $0x30] sm:$0xff]  }
  0x4f   :  { %1148 = vmatpush3.bf16.msra.mxu1 %v1295_v27  ;;  %1127 = vmatprep.subr.bf16.mxu0 %v1296_v28  ;;  %v1342_v27 = vld [vmem:[#allocation8 + $0x28] sm:$0xff]   ;;  %v1343_v28 = vld [vmem:[#allocation8 + $0x20] sm:$0xff]  }
  0x50   :  { %1149 = vmatprep.subr.bf16.mxu1 %v1297_v29  ;;  %v1344_v29 = vld [vmem:[#allocation8 + $0x18] sm:$0xff]  }
  0x52   :  { %1128 = vmatpush3.bf16.msra.mxu0 %v1298_v30  ;;  %v1345_v30 = vld [vmem:[#allocation8 + $0x10] sm:$0xff]  }
  0x53   :  { %1150 = vmatpush3.bf16.msra.mxu1 %v1299_v31  ;;  %1157 = vmatprep.subr.bf16.mxu0 %v1300_v40  ;;  %v1030_v40 = vld [vmem:[%s1562_s2] ss:$0 sm:$0xff] }
  0x54   :  { %1179 = vmatprep.subr.bf16.mxu1 %v1301_v41 }
  0x55   :  { %649 = vmatmul.mubr.bf16.vlgmr.msra.gmra.mxu0 %v89_v37 }
  0x56   :  { %689 = vmatmul.mubr.bf16.vlgmr.msra.gmra.mxu1 %v91_v39  ;;  %1158 = vmatpush3.bf16.msra.mxu0 %v1302_v42 }
  0x57   :  { %1180 = vmatpush3.bf16.msra.mxu1 %v1303_v43  ;;  %1159 = vmatprep.subr.bf16.mxu0 %v1304_v44 }
  0x58   :  { %1181 = vmatprep.subr.bf16.mxu1 %v1305_v45  ;;  %728 = vmatprep.mubr.bf16.mxu0 %v94_v10 }
  0x59   :  { %768 = vmatprep.mubr.bf16.mxu1 %v96_v11 }
  0x5a   :  { %1160 = vmatpush3.bf16.msra.mxu0 %v1306_v46 }
  0x5b   :  { %1182 = vmatpush3.bf16.msra.mxu1 %v1307_v47  ;;  %1161 = vmatprep.subr.bf16.mxu0 %v1308_v48 }
  0x5c   :  { %1183 = vmatprep.subr.bf16.mxu1 %v1309_v49 }
  0x5e   :  { %1162 = vmatpush3.bf16.msra.mxu0 %v1310_v50 }
  0x5f   :  { %1184 = vmatpush3.bf16.msra.mxu1 %v1311_v51  ;;  %1163 = vmatprep.subr.bf16.mxu0 %v1312_v52 }
  0x60   :  { %1185 = vmatprep.subr.bf16.mxu1 %v1313_v53 }
  0x62   :  { %1164 = vmatpush3.bf16.msra.mxu0 %v1314_v54 }
  0x63   :  { %1186 = vmatpush3.bf16.msra.mxu1 %v1315_v55  ;;  %1165 = vmatprep.subr.bf16.mxu0 %v1316_v56 }
  0x64   :  { %1187 = vmatprep.subr.bf16.mxu1 %v1317_v57 }
  0x66   :  { %1166 = vmatpush3.bf16.msra.mxu0 %v1318_v58  ;;  %v1346_v58 = vld [vmem:[#allocation8 + $0x8] sm:$0xff]  }
  0x67   :  { %1188 = vmatpush3.bf16.msra.mxu1 %v1319_v59  ;;  %1167 = vmatprep.subr.bf16.mxu0 %v1320_v60  ;;  %v1347_v59 = vld [vmem:[#allocation8] sm:$0xff]  }
  0x68   :  { %1189 = vmatprep.subr.bf16.mxu1 %v1321_v61  ;;  %v1095_v60 = vld [vmem:[%s1564_s4] ss:$0 sm:$0xff]  ;;  %s1468_s4 = smov [#allocation10]  }
  0x69   :  { %s1019_s24 = sshll.u32 %s1468_s4, 4  ;;  %s1020_s24 = int_to_ptr.vmem [resolvable:$true] %s1019_s24 }
  0x6a   :  { %1168 = vmatpush3.bf16.msra.mxu0 %v1322_v62  ;;  %p1437_p7 = scmp.lt.s32.totalorder %s1020_s24, %s1020_s24 }
  0x6b   :  { %1190 = vmatpush3.bf16.msra.mxu1 %v1323_v63  ;;  %1169 = vmatprep.subr.bf16.mxu0 %v1324_v0 }
  0x6c   :  { %1191 = vmatprep.subr.bf16.mxu1 %v1325_v1 }
  0x6e   :  { %1170 = vmatpush3.bf16.msra.mxu0 %v1326_v2 }
  0x6f   :  { %1192 = vmatpush3.bf16.msra.mxu1 %v1327_v3  ;;  %1171 = vmatprep.subr.bf16.mxu0 %v1328_v4 }
  0x70   :  { %1193 = vmatprep.subr.bf16.mxu1 %v1329_v5  ;;  %v1104_v5 = vld [vmem:[%s1566_s6] ss:$0 sm:$0xff]  ;;  %s1432_s6 = scalar_lea.vmem %s1020_s24, 128 }
  0x71   :  { %p1433_p6 = scmp.ne.s32.totalorder %s1020_s24, %s1432_s6  ;;  %p1438_p8 = scmp.lt.s32.totalorder %s1432_s6, %s1432_s6 }
  0x72   :  { %1172 = vmatpush3.bf16.msra.mxu0 %v1330_v6 }
  0x73   :  { %1194 = vmatpush3.bf16.msra.mxu1 %v1331_v7  ;;  %1219 = vmatprep.subr.bf16.mxu0 %v1466_v17  ;;  %p1439_p9 = por %p1438_p8, %p1437_p7 }
  0x74   :  { %1239 = vmatprep.subr.bf16.mxu1 %v1466_v17 }
  0x75   :  { %729 = vmatmul.mubr.bf16.vlgmr.msra.gmra.mxu0 %v93_v14  ;;  %p1440_p10 = pnand %p1439_p9, %p1433_p6 }
  0x76   :  { %769 = vmatmul.mubr.bf16.vlgmr.msra.gmra.mxu1 %v95_v15  ;;  %1220 = vmatpush3.bf16.msra.mxu0 %v1332_v16 }
  0x77   :  { %1221 = vmatprep.subr.bf16.mxu0 %v1466_v17  ;;  %1235 = vmatprep.mubr.msk.bf16.mxu0 %vm1467_vm0, %v1466_v17 }
  0x78   :  { %1255 = vmatprep.mubr.msk.bf16.mxu1 %vm1467_vm0, %v1466_v17  ;;  %1240 = vmatpush3.bf16.msra.mxu1 %v1340_v25 }
  0x79   :  { %1241 = vmatprep.subr.bf16.mxu1 %v1466_v17 }
  0x7a   :  { %1222 = vmatpush3.bf16.msra.mxu0 %v1333_v18 }
  0x7b   :  { %1223 = vmatprep.subr.bf16.mxu0 %v1466_v17 }
  0x7c   :  { %1242 = vmatpush3.bf16.msra.mxu1 %v1341_v26 }
  0x7d   :  { %1243 = vmatprep.subr.bf16.mxu1 %v1466_v17 }
  0x7e   :  { %1224 = vmatpush3.bf16.msra.mxu0 %v1334_v19 }
  0x7f   :  { %1225 = vmatprep.subr.bf16.mxu0 %v1466_v17 }
  0x80   :  { %1244 = vmatpush3.bf16.msra.mxu1 %v1342_v27 }
  0x81   :  { %1245 = vmatprep.subr.bf16.mxu1 %v1466_v17 }
  0x82   :  { %1226 = vmatpush3.bf16.msra.mxu0 %v1335_v20 }
  0x83   :  { %1227 = vmatprep.subr.bf16.mxu0 %v1466_v17 }
  0x84   :  { %1246 = vmatpush3.bf16.msra.mxu1 %v1343_v28 }
  0x85   :  { %1247 = vmatprep.subr.bf16.mxu1 %v1466_v17 }
  0x86   :  { %1228 = vmatpush3.bf16.msra.mxu0 %v1336_v21 }
  0x87   :  { %1229 = vmatprep.subr.bf16.mxu0 %v1466_v17 }
  0x88   :  { %1248 = vmatpush3.bf16.msra.mxu1 %v1344_v29 }
  0x89   :  { %1249 = vmatprep.subr.bf16.mxu1 %v1466_v17 }
  0x8a   :  { %1230 = vmatpush3.bf16.msra.mxu0 %v1337_v22 }
  0x8b   :  { %1231 = vmatprep.subr.bf16.mxu0 %v1466_v17 }
  0x8c   :  { %1250 = vmatpush3.bf16.msra.mxu1 %v1345_v30 }
  0x8d   :  { %1251 = vmatprep.subr.bf16.mxu1 %v1466_v17 }
  0x8e   :  { %1232 = vmatpush3.bf16.msra.mxu0 %v1338_v23 }
  0x8f   :  { %1233 = vmatprep.subr.bf16.mxu0 %v1466_v17 }
  0x90   :  { %1252 = vmatpush3.bf16.msra.mxu1 %v1346_v58 }
  0x91   :  { %1253 = vmatprep.subr.bf16.mxu1 %v1466_v17 }
  0x92   :  { %1234 = vmatpush3.bf16.msra.mxu0 %v1339_v24 }
  0x94   :  { %1254 = vmatpush3.bf16.msra.mxu1 %v1347_v59 }
 0x115   :  { %v1129_v31 = vpop.f32.mrf.mxu0 }
 0x116   :  { %v1151_v32 = vpop.f32.mrf.mxu1 }
 0x117   :  { %v1130_v33 = vpop.f32.mrf.mxu0 }
 0x118   :  { %v1152_v34 = vpop.f32.mrf.mxu1  ;;  %v1131_v39 = vadd.f32 %v1130_v33, %v1129_v31 }
 0x119   :  { %v1132_v35 = vpop.f32.mrf.mxu0  ;;  %v1153_v42 = vadd.f32 %v1152_v34, %v1151_v32 }
 0x11a   :  { %v1154_v36 = vpop.f32.mrf.mxu1  ;;  %v651_v41 = vadd.f32 %v1131_v39, %v1030_v40 }
 0x11b   :  { %v1133_v37 = vpop.f32.mrf.mxu0 }
 0x11c   :  { %v1155_v38 = vpop.f32.mrf.mxu1  ;;  %v691_v46 = vadd.f32 %v1153_v42, %v651_v41 }
 0x135   :  { %v1173_v43 = vpop.f32.mrf.mxu0 }
 0x136   :  { %v1195_v44 = vpop.f32.mrf.mxu1 }
 0x137   :  { %v1174_v45 = vpop.f32.mrf.mxu0 }
 0x138   :  { %v1175_v47 = vadd.f32 %v1174_v45, %v1173_v43  ;;  %v1196_v48 = vpop.f32.mrf.mxu1 }
 0x139   :  { %v1176_v49 = vpop.f32.mrf.mxu0  ;;  %v1197_v51 = vadd.f32 %v1196_v48, %v1195_v44 }
 0x13a   :  { %v731_v50 = vadd.f32 %v1175_v47, %v691_v46  ;;  %v1198_v52 = vpop.f32.mrf.mxu1 }
 0x13b   :  { %v1177_v53 = vpop.f32.mrf.mxu0 }
 0x13c   :  { %v771_v54 = vadd.f32 %v1197_v51, %v731_v50  ;;  %v1199_v55 = vpop.f32.mrf.mxu1 }
 0x13e   :  { %v776_v56 = vmax.f32 %v771_v54, 0.0 }
 0x140   :  { %v777_v57 = vpack.c.bf16 %v776_v56, %v776_v56 }
 0x142   :  { %1236 = vmatmul.mubr.bf16.vlgmr.msra.gmra.mxu0 %v777_v57 }
 0x202   :  { %v883_v61 = vpop.f32.mrf.mxu0 }
 0x203   :  { %v884_v62 = vadd.f32 %v1095_v60, %v883_v61 }
 0x204   :  { %v1237_v63 = vpop.f32.mrf.mxu0 }
 0x205   :  { %v889_v0 = vmax.f32 %v884_v62, 0.0 }
 0x206   :  { %v886_v1 = vpop.f32.mrf.mxu0 }
 0x207   :  { %v890_v2 = vadd.f32 %v889_v0, %v776_v56 }
 0x208   :  { %v1238_v3 = vpop.f32.mrf.mxu0 }
 0x209   :  { %v891_v4 = vpack.c.bf16 %v890_v2, %v890_v2 }
 0x20b   :  { %1256 = vmatmul.mubr.bf16.vlgmr.msra.gmra.mxu1 %v891_v4 }
 0x2cb   :  { %v997_v6 = vpop.f32.mrf.mxu1 }
 0x2cc   :  { %v998_v7 = vadd.f32 %v1104_v5, %v997_v6 }
 0x2cd   :  { %v1257_v8 = vpop.f32.mrf.mxu1 }
 0x2ce   :  { %1003 = vmax.xlane.f32.xlu0 %v998_v7 }
 0x2cf   :  { %v1000_v9 = vpop.f32.mrf.mxu1 }
 0x2d1   :  { %v1258_v10 = vpop.f32.mrf.mxu1 }
 0x357   :  { %v1004_v11 = vpop.xlane.xlu0 %1003 }
 0x358   :  { %v1005_v12 = vsub.f32 %v998_v7, %v1004_v11 }
 0x35a   :  { %v1006_v13 = vmul.f32 1.442695, %v1005_v12 }
 0x35c   :  { %1348 = vpow2.f32 %v1006_v13 }
 0x369   :  { %v1349_v14 = vpop.eup %1348 }
 0x36a   :  { %1008 = vadd.xlane.f32.xlu0 %v1349_v14 }
 0x3f3   :  { %v1009_v15 = vpop.xlane.xlu0 %1008 }
 0x3f4   :  { %1350 = vrcp.f32 %v1009_v15 }
 0x401   :  { %v1351_v16 = vpop.eup %1350 }
 0x402   :  { %v1011_v17 = vmul.f32 %v1351_v16, %v1349_v14 }
 0x404   :  { %1012 = vst [vmem:[#allocation10] sm:$0xff] %v1011_v17 }
 0x405   :  { %1443 = shalt.err (!%p1440_p10)
}
 0x406   :  { %1022 = dma.vmem_to_hbm [thread:$0]  %s1020_s24, 128, %s1567_s7, [#allocation4]  }
 0x407   :  { %1458 = dma.done.wait [#allocation4], 128  }
 0x408   :  { %1459 = vsyncadd [#allocation4], 4294967168 }
 0x409   :  { %1026 = vsyncpa [#allocation3], 1 }
 0x40a   :  { %1027 = vsyncpa [#allocation6], 1 }
 0x40b   :  { %1028 = vsyncpa [#allocation9], 1 }
 0x40c   :  { %1029 = vsyncpa [#allocation4], 1 }

</bundles_post_ra>
